<compile_context>
chip_gen: v5e
topology: v5e:2x2
jax: 0.10.0
libtpu: 0.0.40
codegen_flags: <defaults>
</compile_context>

<pallas_src>
import jax
import jax.numpy as jnp
from jax import lax
from jax.experimental import pallas as pl
from jax.experimental.pallas import tpu as pltpu


def linear_kernel(x_ref, w_ref, o_ref):
    # y = x @ w.T with w stored as (OUT, IN): contract x dim-1 with w dim-1.
    # f32 accumulation via preferred_element_type keeps the 1e-5 check exact.
    o_ref[...] = lax.dot_general(
        x_ref[...],
        w_ref[...],
        dimension_numbers=(((1,), (1,)), ((), ())),
        preferred_element_type=jnp.float32,
    ).astype(o_ref.dtype)


def linear_no_bias(x, weight):
    """x: (B, IN) f32, weight: (OUT, IN) f32 (native PyTorch layout) -> (B, OUT) f32."""
    B, IN = x.shape
    OUT, IN2 = weight.shape
    assert IN == IN2
    # Gridless call: full arrays live in VMEM, no software pipeline.
    return pl.pallas_call(
        linear_kernel,
        out_shape=jax.ShapeDtypeStruct((B, OUT), x.dtype),
        in_specs=[
            pl.BlockSpec(memory_space=pltpu.MemorySpace.VMEM),
            pl.BlockSpec(memory_space=pltpu.MemorySpace.VMEM),
        ],
        out_specs=pl.BlockSpec(memory_space=pltpu.MemorySpace.VMEM),
        cost_estimate=pl.CostEstimate(
            flops=2 * B * IN * OUT,
            bytes_accessed=4 * (B * IN + IN * OUT + B * OUT),
            transcendentals=0,
        ),
    )(x, weight)


if __name__ == "__main__":
    key = jax.random.PRNGKey(0)
    k_x, k_w = jax.random.split(key)

    B, IN, OUT = 1, 10, 10

    # Deterministic input matching `x = torch.randn(1, 10)`.
    x = jax.random.normal(k_x, (B, IN), dtype=jnp.float32)

    # Deterministic weight init for nn.Linear(10, 10, bias=False):
    # PyTorch weight shape is (OUT, IN); emulate the uniform(-1/sqrt(IN)) bound.
    bound = 1.0 / jnp.sqrt(jnp.float32(IN))
    weight = jax.random.uniform(
        k_w, (OUT, IN), dtype=jnp.float32, minval=-bound, maxval=bound
    )

    # Kernel consumes the weight in native (OUT, IN) layout — no wrapper transpose.
    y = linear_no_bias(x, weight)
    y = jax.block_until_ready(y)

    # Reference check against plain JAX.
    y_ref = x @ weight.T
    assert y.shape == (B, OUT)
    assert jnp.allclose(y, y_ref, atol=1e-5, rtol=1e-5)

    print("KERNEL_OK")
</pallas_src>

<mosaic_0001>
module attributes {stable_mosaic.version = 11 : i64} {
  func.func @linear_kernel(%arg0: memref<1x10xf32, #tpu.memory_space<vmem>>, %arg1: memref<10x10xf32, #tpu.memory_space<vmem>>, %arg2: memref<1x10xf32, #tpu.memory_space<vmem>>) attributes {dimension_semantics = [], scalar_prefetch = 0 : i64, scratch_operands = 0 : i64, tpu.core_type = #tpu.core_type<tc>} {
    %c0 = arith.constant 0 : index
    %c0_0 = arith.constant 0 : index
    %0 = vector.load %arg0[%c0, %c0_0] : memref<1x10xf32, #tpu.memory_space<vmem>>, vector<1x10xf32>
    %c0_1 = arith.constant 0 : index
    %c0_2 = arith.constant 0 : index
    %1 = vector.load %arg1[%c0_1, %c0_2] : memref<10x10xf32, #tpu.memory_space<vmem>>, vector<10x10xf32>
    %cst = arith.constant dense<0.000000e+00> : vector<1x10xf32>
    %2 = tpu.matmul %0, %1, %cst {dimension_numbers = #tpu.dot_dimension_numbers<[1], [1], [0], [0], [0, 0, 1, 0], [], []>} : vector<1x10xf32>, vector<10x10xf32>, vector<1x10xf32> -> vector<1x10xf32>
    %c0_3 = arith.constant 0 : index
    %c0_4 = arith.constant 0 : index
    %3 = vector.load %arg2[%c0_3, %c0_4] : memref<1x10xf32, #tpu.memory_space<vmem>>, vector<1x10xf32>
    tpu.vector_store %arg2[%c0_3, %c0_4], %2 {strides = array<i32>} : memref<1x10xf32, #tpu.memory_space<vmem>>, vector<1x10xf32>,
    return
  }
}

</mosaic_0001>

<bundles_post_ra>
// kernel: tpu_custom_call.1
= control target key start
LH: loop header
LB: loop body
LE: loop exit
PB: predicated region body
PF: predicated region fallthrough
CT: control target
= control target key end

     0   :  { %7 = vsyncpa [#allocation3], 0  ;;  %s210_s0 = inlined_call_operand.hbm [shape: f32[1,10], index: 0, kind: input, shape index: {}]   ;;  %s211_s1 = inlined_call_operand.hbm [shape: f32[10,10], index: 1, kind: input, shape index: {}]   ;;  %s212_s2 = inlined_call_operand.hbm [shape: f32[1,10], index: 2, kind: output, shape index: {}]  }
   0x1   :  { %8 = vsyncpa [#allocation6], 0 }
   0x2   :  { %9 = vsyncpa [#allocation4], 0  ;;  %s15_s11 = sshll.u32 %s210_s0, 4  ;;  %s181_s12 = smov [#allocation2]   ;;  %s16_s11 = int_to_ptr.hbm [resolvable:$true] %s15_s11 }
   0x3   :  { %s17_s13 = sshll.u32 %s181_s12, 4  ;;  %s25_s16 = sshll.u32 %s211_s1, 4  ;;  %s18_s13 = int_to_ptr.vmem [resolvable:$true] %s17_s13  ;;  %s26_s16 = int_to_ptr.hbm [resolvable:$true] %s25_s16 }
   0x4   :  { %20 = dma.hbm_to_vmem [thread:$0]  %s16_s11, 16, %s18_s13, [#allocation3]  }
   0x5   :  { %s182_s17 = smov [#allocation5]   ;;  %s183_s19 = smov 128  }
   0x6   :  { %s27_s18 = sshll.u32 %s182_s17, 4  ;;  %s184_s20 = smov 8   ;;  %s28_s18 = int_to_ptr.vmem [resolvable:$true] %s27_s18 }
   0x7   :  { %33 = dma.hbm_to_vmem [thread:$0]  %s26_s16, 256, %s28_s18, [#allocation6], %s183_s19, %s183_s19, %s184_s20  }
   0x8   :  { %175 = dma.done.wait [#allocation3], 16  }
   0x9   :  { %176 = vsyncadd [#allocation3], 4294967280 }
   0xa   :  { %177 = dma.done.wait [#allocation6], 256  }
   0xb   :  { %178 = vsyncadd [#allocation6], 4294967040  ;;  %vm45_vm0 = vcmask 80896   ;;  %v44_v0 = vld [vmem:[#allocation5 + $0x8] sm:$0x3]  ;;  %v43_v1 = vld [vmem:[#allocation5] sm:$0xff] }
   0xc   :  { %95 = vmatpush.xpose.msk.msra.mxu0 %vm45_vm0, %v44_v0  ;;  %v42_v2 = vld [vmem:[#allocation2] sm:$0x1]  ;;  %s185_s0 = smov [#allocation7]   ;;  %s84_s23 = sshll.u32 %s212_s2, 4  ;;  %vm75_vm1 = vcmask 73728   ;;  %s85_s23 = int_to_ptr.hbm [resolvable:$true] %s84_s23 }
   0xd   :  { %s82_s1 = sshll.u32 %s185_s0, 4  ;;  %s83_s1 = int_to_ptr.vmem [resolvable:$true] %s82_s1 }
  0x10   :  { %96 = vmatpush.xpose.msk.msra.mxu0 %vm45_vm0, %v43_v1 }
  0x13   :  { %97 = vmatmul.msk.f32.vlgmr.msra.gmra.mxu0 %vm45_vm0, %v42_v2 }
  0x90   :  { %v72_v3 = vpop.f32.mrf.mxu0 }
  0x91   :  { %76 = vst.msk [vmem:[#allocation7] sm:$0x1] %vm75_vm1, %v72_v3 }
  0x92   :  { %87 = dma.vmem_to_hbm [thread:$0]  %s83_s1, 16, %s85_s23, [#allocation4]  }
  0x93   :  { %179 = dma.done.wait [#allocation4], 16  }
  0x94   :  { %180 = vsyncadd [#allocation4], 4294967280 }
  0x95   :  { %92 = vsyncpa [#allocation3], 1 }
  0x96   :  { %93 = vsyncpa [#allocation6], 1 }
  0x97   :  { %94 = vsyncpa [#allocation4], 1 }

</bundles_post_ra>
